<compile_context>
chip_gen: v5e
topology: v5e:2x2
jax: 0.10.0
libtpu: 0.0.40
codegen_flags: <defaults>
</compile_context>

<pallas_src>
import functools

import jax
import jax.numpy as jnp
from jax.experimental import pallas as pl
from jax.experimental.pallas import tpu as pltpu


# ----------------------------- Pallas kernel ------------------------------- #

def _adain_kernel(x_ref, w_ref, b_ref, o_ref, *, eps, n):
    # block shapes: x_ref/o_ref (1, N, td); w_ref/b_ref (1, 1, td)
    x = x_ref[0].astype(jnp.float32)                       # (N, td)

    inv_n = 1.0 / float(n)
    mu = jnp.sum(x, axis=0, keepdims=True) * inv_n         # (1, td)  sublane red.
    xc = x - mu
    var = jnp.sum(xc * xc, axis=0, keepdims=True) * inv_n  # biased variance

    inv_std = jax.lax.rsqrt(var + eps)                     # EUP slot
    scale = inv_std * w_ref[0].astype(jnp.float32)         # (1, td) per-feature
    shift = b_ref[0].astype(jnp.float32)                   # (1, td)

    o_ref[0] = (xc * scale + shift).astype(o_ref.dtype)


# ----------------------------- wrapper -------------------------------------- #

def _pick_feature_tile(D):
    # Lane-aligned feature tiles when possible; otherwise the full feature dim
    # (BlockSpec last-dim must be a multiple of 128 or equal the array dim).
    if D % 128 == 0:
        for cand in (512, 256, 128):
            if D % cand == 0:
                return cand
    return D


def adain_forward(x, weight, bias, *, eps=1e-5):
    """Pallas implementation of AdaptiveInstanceNorm2d.forward.

    x:      (B, N, D)
    weight: (B*D,)  -- externally assigned AdaIN scale (one per (b, d) channel)
    bias:   (B*D,)  -- externally assigned AdaIN shift
    """
    B, N, D = x.shape
    assert weight.shape == (B * D,), "weight must be assigned with shape (B*D,)"
    assert bias.shape == (B * D,), "bias must be assigned with shape (B*D,)"

    # channel index b*D + d  ->  (b, d): a plain reshape, no transpose needed.
    w2 = weight.reshape(B, 1, D)
    b2 = bias.reshape(B, 1, D)

    td = _pick_feature_tile(D)
    grid = (B, D // td)

    x_spec = pl.BlockSpec((1, N, td), lambda b, j: (b, 0, j))
    wb_spec = pl.BlockSpec((1, 1, td), lambda b, j: (b, 0, j))

    return pl.pallas_call(
        functools.partial(_adain_kernel, eps=float(eps), n=N),
        out_shape=jax.ShapeDtypeStruct((B, N, D), x.dtype),
        grid=grid,
        in_specs=[x_spec, wb_spec, wb_spec],
        out_specs=x_spec,
        compiler_params=pltpu.CompilerParams(
            dimension_semantics=("parallel", "parallel")
        ),
    )(x, w2, b2)


# ----------------------------- reference ------------------------------------ #

def adain_reference(x, weight, bias, eps=1e-5):
    """Pure-JAX mirror of the PyTorch module's forward output."""
    B, N, D = x.shape
    mu = jnp.mean(x, axis=1, keepdims=True)                  # over N
    var = jnp.mean((x - mu) ** 2, axis=1, keepdims=True)     # biased
    w = weight.reshape(B, 1, D)
    b = bias.reshape(B, 1, D)
    return (x - mu) * jax.lax.rsqrt(var + eps) * w + b


# ----------------------------- main ------------------------------------------ #

if __name__ == "__main__":
    # Small shapes consistent with the module's 'B N D' layout:
    # batch=2, seq(N)=8, num_features(D)=32.  weight/bias are the externally
    # assigned AdaIN parameters with one entry per (batch, feature) channel.
    B, N, D = 2, 8, 32
    eps = 1e-5

    key = jax.random.PRNGKey(0)
    kx, kw, kb = jax.random.split(key, 3)

    x = jax.random.normal(kx, (B, N, D), dtype=jnp.float32)
    weight = jax.random.normal(kw, (B * D,), dtype=jnp.float32)
    bias = jax.random.normal(kb, (B * D,), dtype=jnp.float32)

    y = adain_forward(x, weight, bias, eps=eps)
    y = jax.block_until_ready(y)

    y_ref = adain_reference(x, weight, bias, eps=eps)
    assert y.shape == (B, N, D)
    assert jnp.allclose(y, y_ref, atol=1e-5, rtol=1e-5), "mismatch vs reference"

    print("KERNEL_OK")
</pallas_src>

<mosaic_0001>
module attributes {stable_mosaic.version = 11 : i64} {
  func.func @_adain_kernel(%arg0: i32, %arg1: i32, %arg2: memref<1x8x32xf32, #tpu.memory_space<vmem>>, %arg3: memref<1x1x32xf32, #tpu.memory_space<vmem>>, %arg4: memref<1x1x32xf32, #tpu.memory_space<vmem>>, %arg5: memref<1x8x32xf32, #tpu.memory_space<vmem>>) attributes {dimension_semantics = [#tpu.dimension_semantics<parallel>, #tpu.dimension_semantics<parallel>], iteration_bounds = array<i64: 2, 1>, scalar_prefetch = 0 : i64, scratch_operands = 0 : i64, tpu.core_type = #tpu.core_type<tc>, window_params = [{transform_indices = @transform_0, window_bounds = array<i64: 1, 8, 32>}, {transform_indices = @transform_1, window_bounds = array<i64: 1, 1, 32>}, {transform_indices = @transform_2, window_bounds = array<i64: 1, 1, 32>}, {transform_indices = @transform_3, window_bounds = array<i64: 1, 8, 32>}]} {
    %c0 = arith.constant 0 : index
    %c0_0 = arith.constant 0 : index
    %c0_1 = arith.constant 0 : index
    %0 = vector.load %arg2[%c0, %c0_0, %c0_1] : memref<1x8x32xf32, #tpu.memory_space<vmem>>, vector<1x8x32xf32>
    %1 = vector.shape_cast %0 : vector<1x8x32xf32> to vector<8x32xf32>
    %cst = arith.constant dense<0.000000e+00> : vector<32xf32>
    %2 = vector.multi_reduction <add>, %1, %cst [0] : vector<8x32xf32> to vector<32xf32>
    %3 = vector.shape_cast %2 : vector<32xf32> to vector<1x32xf32>
    %cst_2 = arith.constant 1.250000e-01 : f32
    %4 = vector.broadcast %cst_2 : f32 to vector<1x32xf32>
    %5 = arith.mulf %3, %4 : vector<1x32xf32>
    %6 = vector.broadcast %5 : vector<1x32xf32> to vector<8x32xf32>
    %7 = arith.subf %1, %6 : vector<8x32xf32>
    %8 = arith.mulf %7, %7 : vector<8x32xf32>
    %cst_3 = arith.constant dense<0.000000e+00> : vector<32xf32>
    %9 = vector.multi_reduction <add>, %8, %cst_3 [0] : vector<8x32xf32> to vector<32xf32>
    %10 = vector.shape_cast %9 : vector<32xf32> to vector<1x32xf32>
    %cst_4 = arith.constant 1.250000e-01 : f32
    %11 = vector.broadcast %cst_4 : f32 to vector<1x32xf32>
    %12 = arith.mulf %10, %11 : vector<1x32xf32>
    %cst_5 = arith.constant 9.99999974E-6 : f32
    %13 = vector.broadcast %cst_5 : f32 to vector<1x32xf32>
    %14 = arith.addf %12, %13 : vector<1x32xf32>
    %15 = math.rsqrt %14 : vector<1x32xf32>
    %c0_6 = arith.constant 0 : index
    %c0_7 = arith.constant 0 : index
    %c0_8 = arith.constant 0 : index
    %16 = vector.load %arg3[%c0_6, %c0_7, %c0_8] : memref<1x1x32xf32, #tpu.memory_space<vmem>>, vector<1x1x32xf32>
    %17 = vector.shape_cast %16 : vector<1x1x32xf32> to vector<1x32xf32>
    %18 = arith.mulf %15, %17 : vector<1x32xf32>
    %c0_9 = arith.constant 0 : index
    %c0_10 = arith.constant 0 : index
    %c0_11 = arith.constant 0 : index
    %19 = vector.load %arg4[%c0_9, %c0_10, %c0_11] : memref<1x1x32xf32, #tpu.memory_space<vmem>>, vector<1x1x32xf32>
    %20 = vector.shape_cast %19 : vector<1x1x32xf32> to vector<1x32xf32>
    %21 = vector.broadcast %18 : vector<1x32xf32> to vector<8x32xf32>
    %22 = arith.mulf %7, %21 : vector<8x32xf32>
    %23 = vector.broadcast %20 : vector<1x32xf32> to vector<8x32xf32>
    %24 = arith.addf %22, %23 : vector<8x32xf32>
    %c0_12 = arith.constant 0 : index
    %c0_13 = arith.constant 0 : index
    %c0_14 = arith.constant 0 : index
    %25 = vector.load %arg5[%c0_12, %c0_13, %c0_14] : memref<1x8x32xf32, #tpu.memory_space<vmem>>, vector<1x8x32xf32>
    %26 = vector.shape_cast %25 : vector<1x8x32xf32> to vector<8x32xf32>
    %27 = vector.shape_cast %24 : vector<8x32xf32> to vector<1x8x32xf32>
    tpu.vector_store %arg5[%c0_12, %c0_13, %c0_14], %27 {strides = array<i32>} : memref<1x8x32xf32, #tpu.memory_space<vmem>>, vector<1x8x32xf32>,
    return
  }
  func.func @transform_0(%arg0: i32, %arg1: i32) -> (i32, i32, i32) {
    %c0_i32 = arith.constant 0 : i32
    %c0_i32_0 = arith.constant 0 : i32
    return %arg0, %c0_i32, %arg1 : i32, i32, i32
  }
  func.func @transform_1(%arg0: i32, %arg1: i32) -> (i32, i32, i32) {
    %c0_i32 = arith.constant 0 : i32
    %c0_i32_0 = arith.constant 0 : i32
    return %arg0, %c0_i32, %arg1 : i32, i32, i32
  }
  func.func @transform_2(%arg0: i32, %arg1: i32) -> (i32, i32, i32) {
    %c0_i32 = arith.constant 0 : i32
    %c0_i32_0 = arith.constant 0 : i32
    return %arg0, %c0_i32, %arg1 : i32, i32, i32
  }
  func.func @transform_3(%arg0: i32, %arg1: i32) -> (i32, i32, i32) {
    %c0_i32 = arith.constant 0 : i32
    %c0_i32_0 = arith.constant 0 : i32
    return %arg0, %c0_i32, %arg1 : i32, i32, i32
  }
}

</mosaic_0001>

<bundles_post_ra>
// kernel: tpu_custom_call.1
= control target key start
LH: loop header
LB: loop body
LE: loop exit
PB: predicated region body
PF: predicated region fallthrough
CT: control target
= control target key end

     0   :  { %s906_s0 = inlined_call_operand.hbm [shape: f32[2,8,32], index: 0, kind: input, shape index: {}]   ;;  %s907_s1 = inlined_call_operand.hbm [shape: f32[2,1,32], index: 1, kind: input, shape index: {}]   ;;  %s908_s2 = inlined_call_operand.hbm [shape: f32[2,1,32], index: 2, kind: input, shape index: {}]   ;;  %s909_s3 = inlined_call_operand.hbm [shape: f32[2,8,32], index: 3, kind: output, shape index: {}]  }
   0x1   :  { %912 = sst [smem:[#allocation15_spill]] %s907_s1 }
   0x2   :  { %8 = vsyncpa [#allocation3], 0 }
   0x3   :  { %10 = vsyncpa [#allocation3 + $0x1], 0 }
   0x4   :  { %11 = vsyncpa [#allocation6], 0 }
   0x5   :  { %13 = vsyncpa [#allocation6 + $0x1], 0 }
   0x6   :  { %14 = vsyncpa [#allocation4], 0 }
   0x7   :  { %16 = vsyncpa [#allocation4 + $0x1], 0  ;;  %s739_s12 = smov 0   ;;  %s741_s13 = smov 0  }
   0x8   :  { %s743_s14 = smov 0   ;;  %s745_s15 = smov 0  }
   0x9   :  { %s747_s16 = smov 0   ;;  %s749_s17 = smov 0  }
   0xa LB: > { %913 = sst [smem:[#allocation12_spill]] %s705_s14  ;;  %s770_s18 = sadd.s32 4294967295, %s717_s17   ;;  %s717_s17 = sphi %s749_s17, %s22_s17   ;;  %s713_s16 = sphi %s747_s16, %s929_s16   ;;  %s709_s15 = sphi %s745_s15, %s928_s15   ;;  %s705_s14 = sphi %s743_s14, %s924_s14   ;;  %s701_s13 = sphi %s741_s13, %s927_s13   ;;  %s697_s12 = sphi %s739_s12, %s926_s12  }
   0xb   : > { %s454_s19 = sadd.s32 4294967294, %s717_s17   ;;  %s34_s20 = sadd.s32 1, %s713_s16 }
   0xc   : > { %s43_s21 = sadd.s32 1, %s705_s14  ;;  %p36_p0 = scmp.ge.s32.totalorder %s34_s20, 2 }
   0xd   : > { %p50_p1 = scmp.ne.s32.totalorder %s705_s14, %s701_s13  ;;  %p51_p2 = scmp.eq.s32.totalorder %s717_s17, 0 }
   0xe   : > { %p56_p3 = scmp.ne.s32.totalorder %s701_s13, %s697_s12  ;;  %s931_s20 = smov (%p36_p0, %s34_s20), 0 }
   0xf   : > { %914 = sst [smem:[#allocation13_spill]] %s931_s20  ;;  %p782_p4 = por %p51_p2, %p50_p1 }
  0x10   : > { %p57_p5 = scmp.eq.s32.totalorder %s770_s18, 0  ;;  %s38_s23 = ssub.s32 %s713_s16, %s931_s20 }
  0x11   : > { %p138_p6 = scmp.eq.s32.totalorder %s770_s18, 1  ;;  %p41_p7 = scmp.eq.s32.totalorder %s38_s23, 0 }
  0x12   : > { %p790_p8 = por %p57_p5, %p56_p3  ;;  %p144_p10 = scmp.eq.s32.totalorder %s454_s19, 1 }
  0x13   : > { %p794_p9 = por %p138_p6, %p50_p1  ;;  %p456_p12 = scmp.ge.s32.totalorder %s717_s17, 2 }
  0x14   : > { %s799_s26 = scalar_select %p41_p7, %s705_s14, %s43_s21  }
  0x15   : > { %p801_p11 = por %p144_p10, %p56_p3  ;;  %p488_p13 = scmp.lt.s32.totalorder %s717_s17, 2 }
  0x16   : > { %918 = sst [smem:[#allocation14_spill]] %s799_s26  ;;  %s164_s28 = sand.u32 1, %s705_s14  }
  0x17   : > { %s184_s29 = sand.u32 1, %s717_s17   ;;  %p811_p0 = pnand %p488_p13, %p782_p4 }
  0x18   : > { %s921_s1 = sld [smem:[#allocation15_spill]]  ;;  %s187_s7 = scalar_lea.vmem [#allocation5], %s164_s28 }
  0x19   : > { %s195_s8 = sshll.u32 %s187_s7, 4  ;;  %s185_s10 = scalar_lea.sflag [#allocation6], %s184_s29  ;;  %s196_s8 = int_to_ptr.vmem [resolvable:$true] %s195_s8 }
  0x1a   : > { %p459_p1 = scmp.ge.s32.totalorder %s717_s17, 1  ;;  %p218_p2 = scmp.lt.s32.totalorder %s717_s17, 3 }
  0x1b   : > { %s457_s19 = sshll.u32 %s164_s28, 3  ;;  %s458_s21 = sshll.u32 %s713_s16, 3 }
  0x1c   : > { %p823_p3 = pnand %p459_p1, %p218_p2  ;;  %s173_s4 = scalar_lea.hbm %s906_s0, %s458_s21 }
  0x1d   : > { %s175_s5 = sshll.u32 %s173_s4, 4  ;;  %s165_s29 = scalar_lea.sflag [#allocation3], %s164_s28  ;;  %s176_s5 = int_to_ptr.hbm [resolvable:$true] %s175_s5 }
  0x1e   : > { %s191_s6 = scalar_lea.hbm %s921_s1, %s713_s16  ;;  %s209_s1 = scalar_lea.hbm %s908_s2, %s713_s16 }
  0x1f   : > { %s193_s9 = sshll.u32 %s191_s6, 4  ;;  %s168_s6 = scalar_lea.vmem [#allocation2], %s457_s19  ;;  %s194_s9 = int_to_ptr.hbm [resolvable:$true] %s193_s9 }
  0x20   : > { %480 = dma.hbm_to_vmem [thread:$0]  (!%p811_p0), %s194_s9, 16, %s196_s8, %s185_s10  }
  0x21   : > { %s177_s7 = sshll.u32 %s168_s6, 4  ;;  %s211_s20 = sshll.u32 %s209_s1, 4  ;;  %s178_s7 = int_to_ptr.vmem [resolvable:$true] %s177_s7  ;;  %s212_s20 = int_to_ptr.hbm [resolvable:$true] %s211_s20 }
  0x22   : > { %477 = dma.hbm_to_vmem [thread:$0]  (!%p811_p0), %s176_s5, 128, %s178_s7, %s165_s29  }
  0x23   : > { %s205_s26 = scalar_lea.vmem [#allocation7], %s164_s28  ;;  %222 = sbr.rel (%p823_p3) target bundleno = 110 (0x6e), region = 32 }
  0x24   : > { %s213_s14 = sshll.u32 %s205_s26, 4  ;;  %s842_s19 = sand.u32 (!%p823_p3), 1, %s701_s13   ;;  %s214_s14 = int_to_ptr.vmem [resolvable:$true] %s213_s14 }
  0x25   : > { %483 = dma.hbm_to_vmem [thread:$0]  (!%p811_p0), %s212_s20, 16, %s214_s14, %s185_s10  }
  0x26   : > { %s460_s21 = sshll.u32 (!%p823_p3), %s842_s19, 3  ;;  %s225_s22 = scalar_lea.sflag (!%p823_p3), [#allocation3], %s842_s19 }
  0x27   : > { %s228_s1 = scalar_lea.vmem (!%p823_p3), [#allocation2], %s460_s21 }
  0x28   : > { %684 = dma.done.wait (%p790_p8), %s225_s22, 128  }
  0x29   : > { %686 = vsyncadd (%p790_p8), %s225_s22, 4294967168  ;;  %s234_s14 = sand.u32 1, %s770_s18   ;;  %s237_s26 = scalar_lea.vmem [#allocation5], %s842_s19 }
  0x2a   : > { %s235_s20 = scalar_lea.sflag [#allocation6], %s234_s14 }
  0x2b   : > { %688 = dma.done.wait (%p790_p8), %s235_s20, 32  }
  0x2c   : > { %690 = vsyncadd (%p790_p8), %s235_s20, 4294967264  ;;  %vm279_vm0 = vcmask 261120   ;;  %v278_v0 = vld [vmem:[%s228_s1] sm:$0xff]  ;;  %s246_s28 = scalar_lea.vmem [#allocation7], %s842_s19  ;;  %s463_s18 = sshll.u32 %s709_s15, 3 }
  0x2d   : > { %v280_v1 = vsel %vm279_vm0, %v278_v0, 0.0  ;;  %v309_v26 = vld [vmem:[%s237_s26] sm:$0x1]  ;;  %s331_s10 = scalar_lea.hbm %s909_s3, %s463_s18  ;;  %s277_s11 = scalar_lea.vmem [#allocation8], %s460_s21 }
  0x2e   : > { %v281_v2 = vrot.slane %v280_v1, 4  ;;  %v538_v30 = vld [vmem:[%s246_s28] ss:$0 sm:$0xff]  ;;  %s333_s23 = sshll.u32 %s277_s11, 4  ;;  %s335_s4 = sshll.u32 %s331_s10, 4  ;;  %s334_s23 = int_to_ptr.vmem [resolvable:$true] %s333_s23  ;;  %s336_s4 = int_to_ptr.hbm [resolvable:$true] %s335_s4 }
  0x2f   : > { %s320_s15 = scalar_lea.sflag [#allocation4], %s842_s19  ;;  %s645_s5 = sshra.s32 %s336_s4, 4  ;;  %s646_s5 = int_to_ptr.hbm [resolvable:$true] %s645_s5 }
  0x30   : > { %v282_v3 = vadd.f32 %v281_v2, %v280_v1  ;;  %s647_s6 = scalar_lea.hbm %s646_s5, 8  ;;  %s651_s8 = scalar_lea.hbm %s909_s3, 16 }
  0x31   : > { %p648_p4 = scmp.ne.s32.totalorder %s646_s5, %s647_s6  ;;  %p652_p7 = scmp.lt.s32.totalorder %s646_s5, %s909_s3 }
  0x32   : > { %v283_v4 = vrot.slane %v282_v3, 2  ;;  %p653_p8 = scmp.lt.s32.totalorder %s651_s8, %s647_s6 }
  0x33   : > { %p649_p5 = pnand %p648_p4, %p794_p9 }
  0x34   : > { %v284_v5 = vadd.f32 %v283_v4, %v282_v3  ;;  %p654_p10 = por %p653_p8, %p652_p7 }
  0x35   : > { %p650_p6 = pneg %p649_p5 }
  0x36   : > { %v285_v6 = vrot.slane %v284_v5, 1 }
  0x37   : > { %p655_p13 = pnand %p654_p10, %p650_p6 }
  0x38   : > { %v286_v7 = vadd.f32 %v285_v6, %v284_v5 }
  0x3a   : > { %v287_v8 = vmul.f32 0.125, %v286_v7 }
  0x3c   : > { %v288_v9 = vsub.f32 %v278_v0, %v287_v8 }
  0x3e   : > { %v289_v10 = vmul.f32 %v288_v9, %v288_v9 }
  0x40   : > { %v290_v11 = vsel %vm279_vm0, %v289_v10, 0.0 }
  0x41   : > { %v291_v12 = vrot.slane %v290_v11, 4 }
  0x43   : > { %v292_v13 = vadd.f32 %v291_v12, %v290_v11 }
  0x45   : > { %v293_v14 = vrot.slane %v292_v13, 2 }
  0x47   : > { %v294_v15 = vadd.f32 %v293_v14, %v292_v13 }
  0x49   : > { %v295_v16 = vrot.slane %v294_v15, 1 }
  0x4b   : > { %v296_v17 = vadd.f32 %v295_v16, %v294_v15 }
  0x4d   : > { %v297_v18 = vmul.f32 0.125, %v296_v17 }
  0x4f   : > { %v298_v19 = vadd.f32 1e-05, %v297_v18 }
  0x51   : > { %539 = vrsqrt.f32 %v298_v19  ;;  %vm305_vm1 = vweird.f32 %v298_v19 }
  0x57   : > { %v540_v20 = vpop.eup %539 }
  0x58   : > { %v300_v21 = vmul.f32 %v540_v20, %v298_v19  ;;  %vm306_vm2 = vweird.f32 %v540_v20 }
  0x59   : > { %vm307_vm3 = vmor %vm305_vm1, %vm306_vm2 }
  0x5a   : > { %v301_v22 = vmul.f32 %v540_v20, %v300_v21 }
  0x5c   : > { %v302_v23 = vmul.f32 0.5, %v301_v22 }
  0x5e   : > { %v303_v24 = vsub.f32 1.5, %v302_v23 }
  0x60   : > { %v304_v25 = vmul.f32 %v540_v20, %v303_v24 }
  0x62   : > { %v308_v27 = vsel %vm307_vm3, %v540_v20, %v304_v25 }
  0x63   : > { %v310_v28 = vmul.f32 %v309_v26, %v308_v27 }
  0x65   : > { %v312_v29 = vperm.slane %v310_v28, 0 }
  0x67   : > { %v313_v31 = vmul.f32 %v312_v29, %v288_v9 }
  0x69   : > { %v317_v32 = vadd.f32 %v538_v30, %v313_v31 }
  0x6b   : > { %318 = vst.msk [vmem:[%s277_s11] sm:$0xff] %vm279_vm0, %v317_v32 }
  0x6c   : > { %658 = shalt.err (!%p655_p13)
}
  0x6d   : > { %472 = dma.vmem_to_hbm [thread:$0]  (%p794_p9), %s334_s23, 128, %s336_s4, %s320_s15  }
  0x6e PF: > { %s347_s19 = sand.u32 1, %s697_s12   ;;  %p485_p0 = pnand %p456_p12, %p801_p11 }
  0x6f   : > { %s348_s22 = scalar_lea.sflag [#allocation4], %s347_s19 }
  0x70   : > { %p486_p1 = pneg %p485_p0 }
  0x72   : > { %692 = dma.done.wait (%p486_p1), %s348_s22, 128  }
  0x73   : > { %694 = vsyncadd (%p486_p1), %s348_s22, 4294967168  ;;  %s22_s17 = sadd.s32 1, %s717_s17   ;;  %s923_s1 = sld [smem:[#allocation12_spill]] }
  0x74   : > { %p19_p2 = scmp.ge.s32.totalorder %s22_s17, 4   ;;  %s924_s14 = sld [smem:[#allocation14_spill]] }
  0x75   : > { %s925_s25 = sld [smem:[#allocation13_spill]]  ;;  %s926_s12 = smov %s701_s13 }
  0x76   : > { %s928_s15 = smov %s713_s16 }
  0x77   :  { %21 = sbr.rel (!%p19_p2) target bundleno = 10 (0xa), region = 101 }
  0x79   : > { %s927_s13 = smov %s923_s1 }
  0x7b   : > { %s929_s16 = smov %s925_s25 }
  0x7c   :  { %354 = vsyncpa [#allocation3], 1 }
  0x7d   :  { %356 = vsyncpa [#allocation3 + $0x1], 1 }
  0x7e   :  { %357 = vsyncpa [#allocation6], 1 }
  0x7f   :  { %359 = vsyncpa [#allocation6 + $0x1], 1 }
  0x80   :  { %360 = vsyncpa [#allocation4], 1 }
  0x81   :  { %362 = vsyncpa [#allocation4 + $0x1], 1 }

</bundles_post_ra>
